<compile_context>
chip_gen: v7x
topology: tpu7x:2x2x1
jax: 0.10.0
libtpu: 0.0.40
codegen_flags: <defaults>
</compile_context>

<pallas_src>
import functools

import jax
import jax.numpy as jnp
from jax import lax
from jax.experimental import pallas as pl
from jax.experimental.pallas import tpu as pltpu

LANES = 128
SUBLANES = 8
# Row granularity for both the tile and the in-kernel compute chunk.  64 keeps
# the block's second-to-last dim a multiple of the native sublane tiling for
# f32 (8), bf16 (16) and int8/fp8 (32), and gives ~8 vregs of work per loop
# iteration so the fori_loop overhead is noise.
ROW_ALIGN = 64
CHUNK_ROWS = 64
# (1024, 128) f32 block = 512 KiB; 2 inputs x 2 pipeline buffers (+ output for
# 'none') ~ 2-3 MiB -> comfortably under scoped VMEM on v5e/v6e/v7x.
MAX_TILE_ROWS = 1024


def _round_up(a, b):
    return (a + b - 1) // b * b


def _focal_weight(base, gamma):
    """(1 - pt)**gamma specialised: integer -> repeated multiplies,
    half-integer -> sqrt factorisation, otherwise clamped pow.
    Returns None when gamma == 0 (weight is identically 1)."""
    g = float(gamma)
    if g == 0.0:
        return None
    if g.is_integer() and 0.0 < g <= 16.0:
        w = base
        for _ in range(int(g) - 1):
            w = w * base
        return w
    if (2.0 * g).is_integer() and 0.0 < g <= 16.5:
        w = jnp.sqrt(base)                 # 1 extra EUP op instead of pow's 2
        for _ in range(int(g)):
            w = w * base
        return w
    # Clamp so pow (exp(g*log(.))) never sees log(0) -> NaN.
    return jnp.power(jnp.maximum(base, jnp.float32(1e-30)), jnp.float32(g))


def _focal_elementwise(x, t, *, gamma, alpha=None):
    """Stable BCE-with-logits + focal weighting in f32.

    3 transcendentals / element (exp, log1p, exp) + optional sqrt; no
    reciprocal.  Pure jnp, so it is reused both inside the kernel and for the
    < 128-element ragged tail in plain JAX.
    """
    x = x.astype(jnp.float32)
    t = t.astype(jnp.float32)
    # binary_cross_entropy_with_logits (reduction='none'), numerically stable:
    #   max(x, 0) - x*t + log(1 + exp(-|x|))
    bce = jnp.maximum(x, 0.0) - x * t + jnp.log1p(jnp.exp(-jnp.abs(x)))
    pt = jnp.exp(-bce)                     # reuse bce; no reciprocal needed
    base = jnp.maximum(1.0 - pt, 0.0)      # guard sqrt/pow against round-off
    w = _focal_weight(base, gamma)
    fl = bce if w is None else w * bce
    if alpha is not None and float(alpha) != 1.0:
        fl = jnp.float32(alpha) * fl
    return fl


def _focal_partial_sum_kernel(x_ref, t_ref, out_ref, *, gamma, tile_rows,
                              need_mask, valid_rows_last):
    """Per-block partial sums: (tile_rows, 128) -> (8, 128) in f32.

    The tile is consumed in (CHUNK_ROWS, 128) chunks accumulated into a single
    f32 carry, so the full elementwise result is never materialised in VMEM.
    Only the (possibly ragged) last block pays for the row mask.
    """
    nchunks = tile_rows // CHUNK_ROWS

    def accum(masked):
        if masked:
            riota = lax.broadcasted_iota(jnp.int32, (CHUNK_ROWS, LANES), 0)

        def body(c, acc):
            off = pl.multiple_of(c * CHUNK_ROWS, CHUNK_ROWS)
            fl = _focal_elementwise(x_ref[pl.ds(off, CHUNK_ROWS), :],
                                    t_ref[pl.ds(off, CHUNK_ROWS), :],
                                    gamma=gamma)
            if masked:
                fl = jnp.where(off + riota < valid_rows_last, fl, 0.0)
            return acc + fl

        return lax.fori_loop(0, nchunks, body,
                             jnp.zeros((CHUNK_ROWS, LANES), jnp.float32))

    def finish(acc):
        out_ref[...] = jnp.sum(
            acc.reshape(CHUNK_ROWS // SUBLANES, SUBLANES, LANES), axis=0)

    if need_mask:
        is_last = pl.program_id(0) == pl.num_programs(0) - 1

        @pl.when(is_last)
        def _():
            finish(accum(True))

        @pl.when(jnp.logical_not(is_last))
        def _():
            finish(accum(False))
    else:
        finish(accum(False))


def _focal_none_kernel(x_ref, t_ref, out_ref, *, alpha, gamma, tile_rows):
    """Elementwise focal loss, chunked so intermediates stay in vregs.
    Out-of-bounds rows of the last block are dropped by Pallas on writeback."""
    nchunks = tile_rows // CHUNK_ROWS

    @pl.loop(0, nchunks)
    def _(c):
        off = pl.multiple_of(c * CHUNK_ROWS, CHUNK_ROWS)
        fl = _focal_elementwise(x_ref[pl.ds(off, CHUNK_ROWS), :],
                                t_ref[pl.ds(off, CHUNK_ROWS), :],
                                gamma=gamma, alpha=alpha)
        out_ref[pl.ds(off, CHUNK_ROWS), :] = fl.astype(out_ref.dtype)


def _choose_tile_rows(rows):
    tile = min(MAX_TILE_ROWS, _round_up(rows, ROW_ALIGN))
    # Guarantee >= 2 grid blocks whenever there is enough work so the
    # "parallel" axis can be sharded across v7x's two TensorCores
    # (no effect on v5e/v6e, which have a single TC).
    if rows >= 2 * ROW_ALIGN and pl.cdiv(rows, tile) < 2:
        tile = _round_up(pl.cdiv(rows, 2), ROW_ALIGN)
    return tile


def focal_loss(inputs, targets, alpha=1.0, gamma=1.0, reduction="mean"):
    """JAX/Pallas equivalent of FocalLoss.forward(inputs, targets)."""
    orig_shape = inputs.shape
    orig_dtype = inputs.dtype
    n = int(inputs.size)

    if n == 0:  # guard: mean of empty would otherwise divide by zero
        if reduction == "sum":
            return jnp.zeros((), orig_dtype)
        if reduction == "mean":
            return jnp.full((), jnp.nan, orig_dtype)   # matches torch
        return jnp.zeros(orig_shape, orig_dtype)

    x_flat = inputs.reshape(-1)
    t_flat = targets.reshape(-1)

    rows = n // LANES              # complete 128-lane rows -> Pallas kernel
    rem = n - rows * LANES         # < 128-element ragged tail -> plain JAX
    n_main = rows * LANES

    # Too small for even one lane-dense row: plain JAX (a kernel launch would
    # be pure overhead here).
    if rows == 0:
        if reduction in ("mean", "sum"):
            total = jnp.sum(_focal_elementwise(x_flat, t_flat, gamma=gamma),
                            dtype=jnp.float32) * jnp.float32(alpha)
            if reduction == "mean":
                total = total / jnp.float32(n)
            return total.astype(orig_dtype)
        fl = _focal_elementwise(x_flat, t_flat, gamma=gamma, alpha=alpha)
        return fl.astype(orig_dtype).reshape(orig_shape)

    # Lane-aligned prefix streams straight from the original buffers in their
    # original dtype.  When n % 128 == 0 this is a free reshape (no jnp.pad,
    # no staging copy); otherwise only the tiny tail is handled separately.
    x2 = (x_flat if rem == 0 else x_flat[:n_main]).reshape(rows, LANES)
    t2 = (t_flat if rem == 0 else t_flat[:n_main]).reshape(rows, LANES)

    tile_rows = _choose_tile_rows(rows)
    num_blocks = pl.cdiv(rows, tile_rows)
    need_mask = (rows % tile_rows) != 0
    valid_rows_last = rows - (num_blocks - 1) * tile_rows

    grid = (num_blocks,)
    tile_spec = pl.BlockSpec((tile_rows, LANES), lambda i: (i, 0))
    bytes_in = (x2.size * x2.dtype.itemsize + t2.size * t2.dtype.itemsize)
    flops = 16 * n_main
    transcendentals = 3 * n_main
    cparams = pltpu.CompilerParams(dimension_semantics=("parallel",))

    if reduction in ("mean", "sum"):
        kernel = functools.partial(
            _focal_partial_sum_kernel, gamma=float(gamma),
            tile_rows=tile_rows, need_mask=need_mask,
            valid_rows_last=valid_rows_last)
        partials = pl.pallas_call(
            kernel,
            out_shape=jax.ShapeDtypeStruct(
                (num_blocks * SUBLANES, LANES), jnp.float32),
            grid=grid,
            in_specs=[tile_spec, tile_spec],
            out_specs=pl.BlockSpec((SUBLANES, LANES), lambda i: (i, 0)),
            compiler_params=cparams,
            cost_estimate=pl.CostEstimate(
                flops=flops, transcendentals=transcendentals,
                bytes_accessed=bytes_in + num_blocks * SUBLANES * LANES * 4),
        )(x2, t2)
        total = jnp.sum(partials, dtype=jnp.float32)
        if rem:
            total = total + jnp.sum(
                _focal_elementwise(x_flat[n_main:], t_flat[n_main:],
                                   gamma=gamma), dtype=jnp.float32)
        total = total * jnp.float32(alpha)     # alpha hoisted out of kernel
        if reduction == "mean":
            total = total / jnp.float32(n)
        return total.astype(orig_dtype)

    # reduction == 'none': write once in the original (possibly narrow) dtype.
    kernel = functools.partial(
        _focal_none_kernel, alpha=float(alpha), gamma=float(gamma),
        tile_rows=tile_rows)
    fl2 = pl.pallas_call(
        kernel,
        out_shape=jax.ShapeDtypeStruct((rows, LANES), orig_dtype),
        grid=grid,
        in_specs=[tile_spec, tile_spec],
        out_specs=tile_spec,
        compiler_params=cparams,
        cost_estimate=pl.CostEstimate(
            flops=flops, transcendentals=transcendentals,
            bytes_accessed=bytes_in + n_main * jnp.dtype(orig_dtype).itemsize),
    )(x2, t2)
    out = fl2.reshape(-1)
    if rem:
        tail = _focal_elementwise(x_flat[n_main:], t_flat[n_main:],
                                  gamma=gamma, alpha=alpha).astype(orig_dtype)
        out = jnp.concatenate([out, tail])
    return out.reshape(orig_shape)


def _focal_loss_ref(inputs, targets, alpha=1.0, gamma=1.0, reduction="mean"):
    """Pure-JAX reference (mirrors the PyTorch module)."""
    x = inputs.astype(jnp.float32)
    t = targets.astype(jnp.float32)
    bce = jnp.maximum(x, 0.0) - x * t + jnp.log1p(jnp.exp(-jnp.abs(x)))
    pt = jnp.exp(-bce)
    fl = alpha * (1.0 - pt) ** gamma * bce
    if reduction == "mean":
        return fl.mean()
    elif reduction == "sum":
        return fl.sum()
    return fl


if __name__ == "__main__":
    key = jax.random.PRNGKey(0)
    k1, k2, k3, k4, k5, k6, k7, k8 = jax.random.split(key, 8)

    # 1) Small NCHW-like segmentation logit map; default hyperparameters.
    #    Lane-aligned (zero wrapper copies), single masked block.
    x = jax.random.normal(k1, (2, 4, 16, 16), jnp.float32)
    t = (jax.random.uniform(k2, (2, 4, 16, 16)) > 0.5).astype(jnp.float32)
    alpha, gamma = 1.0, 1.0

    out_mean = jax.block_until_ready(focal_loss(x, t, alpha, gamma, "mean"))
    out_sum = jax.block_until_ready(focal_loss(x, t, alpha, gamma, "sum"))
    out_none = jax.block_until_ready(focal_loss(x, t, alpha, gamma, "none"))
    assert jnp.allclose(out_mean, _focal_loss_ref(x, t, alpha, gamma, "mean"),
                        atol=1e-5, rtol=1e-5)
    assert jnp.allclose(out_sum, _focal_loss_ref(x, t, alpha, gamma, "sum"),
                        atol=1e-3, rtol=1e-4)
    assert out_none.shape == (2, 4, 16, 16)
    assert jnp.allclose(out_none, _focal_loss_ref(x, t, alpha, gamma, "none"),
                        atol=1e-5, rtol=1e-5)

    # 2) Larger map, common focal setting (integer-gamma path); >= 2 grid
    #    blocks (megacore-friendly), unmasked fast path.
    x2 = jax.random.normal(k3, (4, 8, 32, 32), jnp.float32)
    t2 = (jax.random.uniform(k4, (4, 8, 32, 32)) > 0.7).astype(jnp.float32)
    out2 = jax.block_until_ready(focal_loss(x2, t2, 0.25, 2.0, "mean"))
    assert jnp.allclose(out2, _focal_loss_ref(x2, t2, 0.25, 2.0, "mean"),
                        atol=1e-5, rtol=1e-5)

    # 3) Multi-block grid whose last block is ragged (exercises the
    #    pl.when-gated last-block row mask).
    x3 = jax.random.normal(k5, (1, 300, 128), jnp.float32)
    t3 = (jax.random.uniform(k6, (1, 300, 128)) > 0.5).astype(jnp.float32)
    out3 = jax.block_until_ready(focal_loss(x3, t3, 1.0, 2.0, "sum"))
    assert jnp.allclose(out3, _focal_loss_ref(x3, t3, 1.0, 2.0, "sum"),
                        atol=1e-2, rtol=1e-4)

    # 4) Non-lane-aligned element count + half-integer gamma (sqrt path):
    #    kernel handles the lane-aligned prefix, plain JAX the <128 tail.
    x4 = jax.random.normal(k7, (3, 5, 67), jnp.float32)
    t4 = (jax.random.uniform(k8, (3, 5, 67)) > 0.5).astype(jnp.float32)
    out4s = jax.block_until_ready(focal_loss(x4, t4, 1.0, 1.5, "sum"))
    assert jnp.allclose(out4s, _focal_loss_ref(x4, t4, 1.0, 1.5, "sum"),
                        atol=1e-3, rtol=1e-4)
    out4n = jax.block_until_ready(focal_loss(x4, t4, 0.25, 1.5, "none"))
    assert out4n.shape == (3, 5, 67)
    assert jnp.allclose(out4n, _focal_loss_ref(x4, t4, 0.25, 1.5, "none"),
                        atol=1e-5, rtol=1e-5)

    # 5) Generic non-integer gamma (clamped pow path).
    out5 = jax.block_until_ready(focal_loss(x, t, 1.0, 1.3, "sum"))
    assert jnp.allclose(out5, _focal_loss_ref(x, t, 1.0, 1.3, "sum"),
                        atol=1e-3, rtol=1e-4)

    # 6) bf16 inputs stream in bf16 (half the HBM read traffic).
    xb = x.astype(jnp.bfloat16)
    outb = jax.block_until_ready(focal_loss(xb, t, alpha, gamma, "mean"))
    assert jnp.allclose(outb.astype(jnp.float32),
                        _focal_loss_ref(xb, t, alpha, gamma, "mean"),
                        atol=1e-2, rtol=1e-2)

    print("KERNEL_OK")
</pallas_src>

<mosaic_0001>
module attributes {stable_mosaic.version = 11 : i64} {
  func.func @_focal_partial_sum_kernel(%arg0: i32, %arg1: memref<64x128xf32, #tpu.memory_space<vmem>>, %arg2: memref<64x128xf32, #tpu.memory_space<vmem>>, %arg3: memref<8x128xf32, #tpu.memory_space<vmem>>) attributes {dimension_semantics = [#tpu.dimension_semantics<parallel>], iteration_bounds = array<i64: 1>, scalar_prefetch = 0 : i64, scratch_operands = 0 : i64, tpu.core_type = #tpu.core_type<tc>, window_params = [{transform_indices = @transform_0, window_bounds = array<i64: 64, 128>}, {transform_indices = @transform_1, window_bounds = array<i64: 64, 128>}, {transform_indices = @transform_2, window_bounds = array<i64: 8, 128>}]} {
    %c0_i32 = arith.constant 0 : i32
    %0 = arith.cmpi eq, %arg0, %c0_i32 : i32
    %1 = arith.extui %0 : i1 to i32
    %c0_i32_0 = arith.constant 0 : i32
    %2 = arith.cmpi ne, %1, %c0_i32_0 : i32
    scf.if %2 {
      %6 = tpu.iota {dimensions = array<i32: 0>} : vector<64x128xi32>
      %cst = arith.constant 0.000000e+00 : f32
      %7 = vector.broadcast %cst : f32 to vector<64x128xf32>
      %c0_i32_2 = arith.constant 0 : i32
      %c64_i32 = arith.constant 64 : i32
      %8 = arith.muli %c0_i32_2, %c64_i32 : i32
      %9 = tpu.assume_multiple %8, 64 : i32
      %10 = arith.index_cast %9 : i32 to index
      %c0 = arith.constant 0 : index
      %11 = vector.load %arg1[%10, %c0] : memref<64x128xf32, #tpu.memory_space<vmem>>, vector<64x128xf32>
      %12 = arith.index_cast %9 : i32 to index
      %c0_3 = arith.constant 0 : index
      %13 = vector.load %arg2[%12, %c0_3] : memref<64x128xf32, #tpu.memory_space<vmem>>, vector<64x128xf32>
      %cst_4 = arith.constant 0.000000e+00 : f32
      %14 = vector.broadcast %cst_4 : f32 to vector<64x128xf32>
      %15 = arith.maximumf %11, %14 : vector<64x128xf32>
      %16 = arith.mulf %11, %13 : vector<64x128xf32>
      %17 = arith.subf %15, %16 : vector<64x128xf32>
      %18 = math.absf %11 : vector<64x128xf32>
      %cst_5 = arith.constant 0.000000e+00 : f32
      %19 = vector.broadcast %cst_5 : f32 to vector<64x128xf32>
      %20 = arith.subf %19, %18 : vector<64x128xf32>
      %21 = math.exp %20 : vector<64x128xf32>
      %22 = math.log1p %21 : vector<64x128xf32>
      %23 = arith.addf %17, %22 : vector<64x128xf32>
      %cst_6 = arith.constant 0.000000e+00 : f32
      %24 = vector.broadcast %cst_6 : f32 to vector<64x128xf32>
      %25 = arith.subf %24, %23 : vector<64x128xf32>
      %26 = math.exp %25 : vector<64x128xf32>
      %cst_7 = arith.constant 1.000000e+00 : f32
      %27 = vector.broadcast %cst_7 : f32 to vector<64x128xf32>
      %28 = arith.subf %27, %26 : vector<64x128xf32>
      %cst_8 = arith.constant 0.000000e+00 : f32
      %29 = vector.broadcast %cst_8 : f32 to vector<64x128xf32>
      %30 = arith.maximumf %28, %29 : vector<64x128xf32>
      %31 = arith.mulf %30, %23 : vector<64x128xf32>
      %32 = vector.broadcast %9 : i32 to vector<64x128xi32>
      %33 = arith.addi %32, %6 : vector<64x128xi32>
      %c16_i32 = arith.constant 16 : i32
      %34 = vector.broadcast %c16_i32 : i32 to vector<64x128xi32>
      %35 = arith.cmpi slt, %33, %34 : vector<64x128xi32>
      %cst_9 = arith.constant 0.000000e+00 : f32
      %36 = vector.broadcast %cst_9 : f32 to vector<64x128xf32>
      %37 = arith.select %35, %31, %36 : vector<64x128xi1>, vector<64x128xf32>
      %38 = arith.addf %7, %37 : vector<64x128xf32>
      %c1_i32 = arith.constant 1 : i32
      %39 = vector.shape_cast %38 : vector<64x128xf32> to vector<8x8x128xf32>
      %cst_10 = arith.constant dense<0.000000e+00> : vector<8x128xf32>
      %40 = vector.multi_reduction <add>, %39, %cst_10 [0] : vector<8x8x128xf32> to vector<8x128xf32>
      %c0_11 = arith.constant 0 : index
      %c0_12 = arith.constant 0 : index
      %41 = vector.load %arg3[%c0_11, %c0_12] : memref<8x128xf32, #tpu.memory_space<vmem>>, vector<8x128xf32>
      tpu.vector_store %arg3[%c0_11, %c0_12], %40 {strides = array<i32>} : memref<8x128xf32, #tpu.memory_space<vmem>>, vector<8x128xf32>,
    } else {
    }
    %true = arith.constant true
    %3 = arith.xori %0, %true : i1
    %4 = arith.extui %3 : i1 to i32
    %c0_i32_1 = arith.constant 0 : i32
    %5 = arith.cmpi ne, %4, %c0_i32_1 : i32
    scf.if %5 {
      %cst = arith.constant 0.000000e+00 : f32
      %6 = vector.broadcast %cst : f32 to vector<64x128xf32>
      %c0_i32_2 = arith.constant 0 : i32
      %c64_i32 = arith.constant 64 : i32
      %7 = arith.muli %c0_i32_2, %c64_i32 : i32
      %8 = tpu.assume_multiple %7, 64 : i32
      %9 = arith.index_cast %8 : i32 to index
      %c0 = arith.constant 0 : index
      %10 = vector.load %arg1[%9, %c0] : memref<64x128xf32, #tpu.memory_space<vmem>>, vector<64x128xf32>
      %11 = arith.index_cast %8 : i32 to index
      %c0_3 = arith.constant 0 : index
      %12 = vector.load %arg2[%11, %c0_3] : memref<64x128xf32, #tpu.memory_space<vmem>>, vector<64x128xf32>
      %cst_4 = arith.constant 0.000000e+00 : f32
      %13 = vector.broadcast %cst_4 : f32 to vector<64x128xf32>
      %14 = arith.maximumf %10, %13 : vector<64x128xf32>
      %15 = arith.mulf %10, %12 : vector<64x128xf32>
      %16 = arith.subf %14, %15 : vector<64x128xf32>
      %17 = math.absf %10 : vector<64x128xf32>
      %cst_5 = arith.constant 0.000000e+00 : f32
      %18 = vector.broadcast %cst_5 : f32 to vector<64x128xf32>
      %19 = arith.subf %18, %17 : vector<64x128xf32>
      %20 = math.exp %19 : vector<64x128xf32>
      %21 = math.log1p %20 : vector<64x128xf32>
      %22 = arith.addf %16, %21 : vector<64x128xf32>
      %cst_6 = arith.constant 0.000000e+00 : f32
      %23 = vector.broadcast %cst_6 : f32 to vector<64x128xf32>
      %24 = arith.subf %23, %22 : vector<64x128xf32>
      %25 = math.exp %24 : vector<64x128xf32>
      %cst_7 = arith.constant 1.000000e+00 : f32
      %26 = vector.broadcast %cst_7 : f32 to vector<64x128xf32>
      %27 = arith.subf %26, %25 : vector<64x128xf32>
      %cst_8 = arith.constant 0.000000e+00 : f32
      %28 = vector.broadcast %cst_8 : f32 to vector<64x128xf32>
      %29 = arith.maximumf %27, %28 : vector<64x128xf32>
      %30 = arith.mulf %29, %22 : vector<64x128xf32>
      %31 = arith.addf %6, %30 : vector<64x128xf32>
      %c1_i32 = arith.constant 1 : i32
      %32 = vector.shape_cast %31 : vector<64x128xf32> to vector<8x8x128xf32>
      %cst_9 = arith.constant dense<0.000000e+00> : vector<8x128xf32>
      %33 = vector.multi_reduction <add>, %32, %cst_9 [0] : vector<8x8x128xf32> to vector<8x128xf32>
      %c0_10 = arith.constant 0 : index
      %c0_11 = arith.constant 0 : index
      %34 = vector.load %arg3[%c0_10, %c0_11] : memref<8x128xf32, #tpu.memory_space<vmem>>, vector<8x128xf32>
      tpu.vector_store %arg3[%c0_10, %c0_11], %33 {strides = array<i32>} : memref<8x128xf32, #tpu.memory_space<vmem>>, vector<8x128xf32>,
    } else {
    }
    return
  }
  func.func @transform_0(%arg0: i32) -> (i32, i32) {
    %c0_i32 = arith.constant 0 : i32
    %c0_i32_0 = arith.constant 0 : i32
    return %arg0, %c0_i32 : i32, i32
  }
  func.func @transform_1(%arg0: i32) -> (i32, i32) {
    %c0_i32 = arith.constant 0 : i32
    %c0_i32_0 = arith.constant 0 : i32
    return %arg0, %c0_i32 : i32, i32
  }
  func.func @transform_2(%arg0: i32) -> (i32, i32) {
    %c0_i32 = arith.constant 0 : i32
    %c0_i32_0 = arith.constant 0 : i32
    return %arg0, %c0_i32 : i32, i32
  }
}

</mosaic_0001>

<bundles_post_ra>
// kernel: tpu_custom_call.1
= control target key start
LH: loop header
LB: loop body
LE: loop exit
PB: predicated region body
PF: predicated region fallthrough
CT: control target
= control target key end

     0   :  { %7 = vsyncpa [#allocation3], 0  ;;  %s675_s0 = inlined_call_operand.hbm [shape: f32[16,128], index: 0, kind: input, shape index: {}]   ;;  %s676_s1 = inlined_call_operand.hbm [shape: f32[16,128], index: 1, kind: input, shape index: {}]   ;;  %s677_s2 = inlined_call_operand.hbm [shape: f32[8,128], index: 2, kind: output, shape index: {}]  }
   0x1   :  { %8 = vsyncpa [#allocation6], 0 }
   0x2   :  { %9 = vsyncpa [#allocation4], 0 }
   0x3   :  { %14 = vsyncadd [#allocation3], 768  ;;  %s619_s9 = smov [#allocation2]   ;;  %s547_s13 = scalar_lea.hbm %s675_s0, 256 }
   0x4   :  { %s15_s10 = sshll.u32 %s619_s9, 4  ;;  %p548_p0 = scmp.ne.s32.totalorder %s675_s0, %s547_s13  ;;  %s16_s10 = int_to_ptr.vmem [resolvable:$true] %s15_s10 }
   0x5   :  { %p551_p1 = scmp.lt.u32.totalorder %s547_s13, %s675_s0 }
   0x7   :  { %p553_p2 = pnand %p551_p1, %p548_p0 }
   0x9   :  { %556 = shalt.err (!%p553_p2)
}
   0xa   :  { %s557_s18 = scalar_lea.vmem %s16_s10, 256  ;;  %s561_s19 = scalar_lea.vmem %s16_s10, 1024 }
   0xb   :  { %p558_p3 = scmp.ne.s32.totalorder %s16_s10, %s557_s18  ;;  %p562_p4 = scmp.lt.s32.totalorder %s16_s10, %s16_s10 }
   0xc   :  { %p563_p5 = scmp.lt.s32.totalorder %s561_s19, %s557_s18 }
   0xe   :  { %p564_p6 = por %p563_p5, %p562_p4 }
  0x10   :  { %p565_p7 = pnand %p564_p6, %p558_p3 }
  0x12   :  { %568 = shalt.err (!%p565_p7)
}
  0x13   :  { %s620_s20 = smov 128   ;;  %s621_s21 = smov 8  }
  0x14   :  { %21 = dma.hbm_to_vmem [thread:$0]  %s675_s0, 256, %s16_s10, [#allocation3], %s620_s20, %s620_s20, %s621_s21  }
  0x15   :  { %26 = vsyncadd [#allocation6], 768  ;;  %s622_s24 = smov [#allocation5]   ;;  %s569_s28 = scalar_lea.hbm %s676_s1, 256 }
  0x16   :  { %s27_s25 = sshll.u32 %s622_s24, 4  ;;  %p570_p8 = scmp.ne.s32.totalorder %s676_s1, %s569_s28  ;;  %s28_s25 = int_to_ptr.vmem [resolvable:$true] %s27_s25 }
  0x17   :  { %p573_p9 = scmp.lt.u32.totalorder %s569_s28, %s676_s1 }
  0x19   :  { %p575_p10 = pnand %p573_p9, %p570_p8 }
  0x1b   :  { %578 = shalt.err (!%p575_p10)
}
  0x1c   :  { %s579_s5 = scalar_lea.vmem %s28_s25, 256  ;;  %s583_s0 = scalar_lea.vmem %s28_s25, 1024 }
  0x1d   :  { %p580_p11 = scmp.ne.s32.totalorder %s28_s25, %s579_s5  ;;  %p584_p12 = scmp.lt.s32.totalorder %s28_s25, %s28_s25 }
  0x1e   :  { %p585_p13 = scmp.lt.s32.totalorder %s583_s0, %s579_s5 }
  0x20   :  { %p586_p0 = por %p585_p13, %p584_p12 }
  0x22   :  { %p587_p1 = pnand %p586_p0, %p580_p11 }
  0x24   :  { %590 = shalt.err (!%p587_p1)
}
  0x25   :  { %33 = dma.hbm_to_vmem [thread:$0]  %s676_s1, 256, %s28_s25, [#allocation6], %s620_s20, %s620_s20, %s621_s21  }
  0x26   :  { %613 = dma.done.wait [#allocation3], 1024  }
  0x27   :  { %614 = vsyncadd [#allocation3], 4294966272 }
  0x28   :  { %615 = dma.done.wait [#allocation6], 1024  }
  0x29   :  { %616 = vsyncadd [#allocation6], 4294966272  ;;  %v53_v0 = vld [vmem:[#allocation2] sm:$0xff]  ;;  %v54_v1 = vld [vmem:[#allocation2 + $0x8] sm:$0xff]  ;;  %s623_s1 = smov [#allocation7]  }
  0x2a   :  { %v93_v2 = vand.u32 2147483647, %v53_v0  ;;  %v94_v3 = vand.u32 2147483647, %v54_v1  ;;  %v61_v14 = vld [vmem:[#allocation5] sm:$0xff]  ;;  %v62_v15 = vld [vmem:[#allocation5 + $0x8] sm:$0xff] }
  0x2b   :  { %v69_v17 = vmax.f32 %v53_v0, 0.0  ;;  %v77_v18 = vmul.f32 %v61_v14, %v53_v0  ;;  %v70_v21 = vmax.f32 %v54_v1, 0.0  ;;  %v78_v22 = vmul.f32 %v62_v15, %v54_v1  ;;  %s520_s8 = sshll.u32 %s623_s1, 4  ;;  %s521_s8 = int_to_ptr.vmem [resolvable:$true] %s520_s8 }
  0x2c   :  { %v101_v4 = vsub.f32 0.0, %v93_v2  ;;  %v102_v5 = vsub.f32 0.0, %v94_v3  ;;  %s591_s9 = scalar_lea.vmem %s521_s8, 128  ;;  %p596_p3 = scmp.lt.s32.totalorder %s521_s8, %s521_s8 }
  0x2d   :  { %v85_v26 = vsub.f32 %v69_v17, %v77_v18  ;;  %v86_v29 = vsub.f32 %v70_v21, %v78_v22  ;;  %p592_p2 = scmp.ne.s32.totalorder %s521_s8, %s591_s9  ;;  %p597_p4 = scmp.lt.s32.totalorder %s591_s9, %s591_s9 }
  0x2e   :  { %v109_v6 = vmul.f32 1.442695, %v101_v4  ;;  %v111_v7 = vmul.f32 1.442695, %v102_v5 }
  0x2f   :  { %p598_p5 = por %p597_p4, %p596_p3 }
  0x30   :  { %535 = vpow2.f32 %v109_v6 }
  0x31   :  { %537 = vpow2.f32 %v111_v7  ;;  %p599_p6 = pnand %p598_p5, %p592_p2 }
  0x3a   :  { %v536_v8 = vpop.eup %535 }
  0x3b   :  { %v538_v9 = vpop.eup %537  ;;  %v125_v10 = vadd.f32 1.0, %v536_v8  ;;  %v128_v12 = vmul.f32 -0.5, %v536_v8  ;;  %v131_v19 = vand.u32 2147483647, %v536_v8 }
  0x3c   :  { %v134_v11 = vadd.f32 1.0, %v538_v9  ;;  %v137_v13 = vmul.f32 -0.5, %v538_v9  ;;  %v140_v23 = vand.u32 2147483647, %v538_v9 }
  0x3d   :  { %539 = vlog2.f32 %v125_v10  ;;  %v129_v16 = vadd.f32 1.0, %v128_v12  ;;  %vm132_vm0 = vcmp.lt.f32.partialorder %v131_v19, 0.0004427343 }
  0x3e   :  { %541 = vlog2.f32 %v134_v11  ;;  %v138_v20 = vadd.f32 1.0, %v137_v13  ;;  %vm141_vm1 = vcmp.lt.f32.partialorder %v140_v23, 0.0004427343 }
  0x3f   :  { %v130_v24 = vmul.f32 %v536_v8, %v129_v16 }
  0x40   :  { %v139_v27 = vmul.f32 %v538_v9, %v138_v20 }
  0x47   :  { %v540_v25 = vpop.eup %539 }
  0x48   :  { %v542_v28 = vpop.eup %541  ;;  %v127_v30 = vmul.f32 0.6931472, %v540_v25 }
  0x49   :  { %v136_v31 = vmul.f32 0.6931472, %v542_v28 }
  0x4a   :  { %v133_v32 = vsel %vm132_vm0, %v130_v24, %v127_v30 }
  0x4b   :  { %v142_v33 = vsel %vm141_vm1, %v139_v27, %v136_v31  ;;  %v197_v34 = vadd.f32 %v133_v32, %v85_v26 }
  0x4c   :  { %v198_v35 = vadd.f32 %v142_v33, %v86_v29 }
  0x4d   :  { %v205_v36 = vsub.f32 0.0, %v197_v34 }
  0x4e   :  { %v206_v37 = vsub.f32 0.0, %v198_v35 }
  0x4f   :  { %v213_v38 = vmul.f32 1.442695, %v205_v36 }
  0x50   :  { %v215_v39 = vmul.f32 1.442695, %v206_v37 }
  0x51   :  { %543 = vpow2.f32 %v213_v38 }
  0x52   :  { %545 = vpow2.f32 %v215_v39 }
  0x5b   :  { %v544_v40 = vpop.eup %543 }
  0x5c   :  { %v546_v41 = vpop.eup %545  ;;  %v229_v42 = vsub.f32 1.0, %v544_v40 }
  0x5d   :  { %v230_v43 = vsub.f32 1.0, %v546_v41 }
  0x5e   :  { %v237_v44 = vmax.f32 %v229_v42, 0.0 }
  0x5f   :  { %v238_v45 = vmax.f32 %v230_v43, 0.0 }
  0x60   :  { %v245_v46 = vmul.f32 %v237_v44, %v197_v34 }
  0x61   :  { %v246_v47 = vmul.f32 %v238_v45, %v198_v35 }
  0x63   :  { %v286_v48 = vadd.f32 %v246_v47, %v245_v46 }
  0x65   :  { %293 = vst [vmem:[#allocation7] sm:$0xff] %v286_v48 }
  0x66   :  { %602 = shalt.err (!%p599_p6)
}
  0x67   :  { %s603_s12 = scalar_lea.hbm %s677_s2, 128 }
  0x68   :  { %p604_p7 = scmp.ne.s32.totalorder %s677_s2, %s603_s12  ;;  %p607_p8 = scmp.lt.u32.totalorder %s603_s12, %s677_s2 }
  0x6a   :  { %p609_p9 = pnand %p607_p8, %p604_p7 }
  0x6c   :  { %612 = shalt.err (!%p609_p9)
}
  0x6d   :  { %523 = dma.vmem_to_hbm [thread:$0]  %s521_s8, 128, %s677_s2, [#allocation4]  }
  0x6e   :  { %617 = dma.done.wait [#allocation4], 128  }
  0x6f   :  { %618 = vsyncadd [#allocation4], 4294967168 }
  0x70   :  { %527 = vsyncpa [#allocation3], 1 }
  0x71   :  { %528 = vsyncpa [#allocation6], 1 }
  0x72   :  { %529 = vsyncpa [#allocation4], 1 }

</bundles_post_ra>
